<compile_context>
chip_gen: v7x
topology: tpu7x:2x2x1
jax: 0.10.0
libtpu: 0.0.40
codegen_flags: <defaults>
</compile_context>

<pallas_src>
import jax
import jax.numpy as jnp
from jax.experimental import pallas as pl
from jax.experimental.pallas import tpu as pltpu


def mlp_kernel(xt_ref, w0_ref, b0_ref, w1_ref, b1_ref, w2_ref, b2_ref,
               w3_ref, b3_ref, ot_ref):
    # xt_ref: (D_in, bt) bf16; w*: (out, in) bf16; b*: (out, 1) f32.
    # Whole MLP hot path in-kernel: 4 MXU matmuls + VPU bias/ReLU (f32).
    h = jnp.dot(w0_ref[...], xt_ref[...], preferred_element_type=jnp.float32)
    h = jnp.maximum(h + b0_ref[...], 0.0).astype(jnp.bfloat16)

    h = jnp.dot(w1_ref[...], h, preferred_element_type=jnp.float32)
    h = jnp.maximum(h + b1_ref[...], 0.0).astype(jnp.bfloat16)

    h = jnp.dot(w2_ref[...], h, preferred_element_type=jnp.float32)
    h = jnp.maximum(h + b2_ref[...], 0.0).astype(jnp.bfloat16)

    out = jnp.dot(w3_ref[...], h, preferred_element_type=jnp.float32)
    ot_ref[...] = (out + b3_ref[...]).astype(ot_ref.dtype)


def _pick_batch_tile(B, requested):
    """Lane axis carries batch: use full batch for small B (block == full dim
    is always legal), otherwise lane-dense multiples of 128 with >= 2 grid
    steps so v7x's second TensorCore is used (no effect on v5e/v6e)."""
    if B < 256:
        return B
    bt = min(requested, B // 2)
    bt = max(128, (bt // 128) * 128)
    return bt


def mlp_forward(x, params, *, batch_tile=512):
    """x: (B, D_in) float32.  params: list of (W, b), W: (out, in), b: (out, 1)."""
    B, D_in = x.shape
    (w0, b0), (w1, b1), (w2, b2), (w3, b3) = params
    h0, h1, h2 = w0.shape[0], w1.shape[0], w2.shape[0]
    D_out = w3.shape[0]

    bt = _pick_batch_tile(B, batch_tile)
    grid = (pl.cdiv(B, bt),)

    # bf16 MXU operands; biases stay f32 (accumulation / epilogue in f32).
    xt = x.T.astype(jnp.bfloat16)                    # (D_in, B): batch on lanes
    w0b, w1b, w2b, w3b = (w.astype(jnp.bfloat16) for w in (w0, w1, w2, w3))

    def x_map(i):
        return (0, i)

    def rep_map(i):   # weights/biases: the same (only) block every grid step
        return (0, 0)

    # NOTE: weight/bias blocks are constant across the grid; single-buffering
    # them (pl.Buffered(1)) only matters if hidden sizes scale up — skipped
    # here (~21 KiB total at these dims).
    in_specs = [
        pl.BlockSpec((D_in, bt), x_map),
        pl.BlockSpec(w0.shape, rep_map), pl.BlockSpec(b0.shape, rep_map),
        pl.BlockSpec(w1.shape, rep_map), pl.BlockSpec(b1.shape, rep_map),
        pl.BlockSpec(w2.shape, rep_map), pl.BlockSpec(b2.shape, rep_map),
        pl.BlockSpec(w3.shape, rep_map), pl.BlockSpec(b3.shape, rep_map),
    ]
    out_spec = pl.BlockSpec((D_out, bt), x_map)

    flops = 2 * B * (D_in * h0 + h0 * h1 + h1 * h2 + h2 * D_out)
    bytes_accessed = (
        xt.size * 2
        + sum(w.size * 2 for w in (w0, w1, w2, w3))
        + sum(b.size * 4 for b in (b0, b1, b2, b3))
        + B * D_out * 4)

    out_t = pl.pallas_call(
        mlp_kernel,
        out_shape=jax.ShapeDtypeStruct((D_out, B), jnp.float32),
        grid=grid,
        in_specs=in_specs,
        out_specs=out_spec,
        compiler_params=pltpu.CompilerParams(
            dimension_semantics=("parallel",),
            vmem_limit_bytes=32 * 1024 * 1024),
        cost_estimate=pl.CostEstimate(
            flops=flops, transcendentals=0, bytes_accessed=bytes_accessed),
    )(xt, w0b, b0, w1b, b1, w2b, b2, w3b, b3)

    return out_t.T                                   # (B, D_out) f32


def init_linear(key, fan_in, fan_out):
    """PyTorch nn.Linear default init: U(-1/sqrt(fan_in), 1/sqrt(fan_in)).
    Stored as W: (out, in), b: (out, 1) to match nn.Linear's layout."""
    kw, kb = jax.random.split(key)
    bound = 1.0 / jnp.sqrt(jnp.float32(fan_in))
    w = jax.random.uniform(kw, (fan_out, fan_in), jnp.float32, -bound, bound)
    b = jax.random.uniform(kb, (fan_out, 1), jnp.float32, -bound, bound)
    return w, b


def reference_mlp(x, params):
    """Pure-JAX f32 reference with PyTorch Linear semantics (x @ W.T + b)."""
    (w0, b0), (w1, b1), (w2, b2), (w3, b3) = params
    h = jnp.maximum(x @ w0.T + b0.T, 0.0)
    h = jnp.maximum(h @ w1.T + b1.T, 0.0)
    h = jnp.maximum(h @ w2.T + b2.T, 0.0)
    return h @ w3.T + b3.T


if __name__ == "__main__":
    key = jax.random.PRNGKey(0)
    k_x, k0, k1, k2, k3 = jax.random.split(key, 5)

    # Model(input=16, output=8, hiddens=(32, 32, 32)), batch=8
    B, D_in, H, D_out = 8, 16, 32, 8
    x = jax.random.normal(k_x, (B, D_in), jnp.float32)

    params = [
        init_linear(k0, D_in, H),   # self.inp
        init_linear(k1, H, H),      # self.fcs[0]
        init_linear(k2, H, H),      # self.fcs[1]
        init_linear(k3, H, D_out),  # self.out
    ]

    out = mlp_forward(x, params)
    out = jax.block_until_ready(out)

    ref = reference_mlp(x, params)
    assert out.shape == (B, D_out)
    # bf16 matmul operands => relaxed tolerance vs the f32 reference.
    assert jnp.allclose(out, ref, atol=2e-2, rtol=2e-2)

    print("KERNEL_OK")
</pallas_src>

<mosaic_0001>
module attributes {stable_mosaic.version = 11 : i64} {
  func.func @mlp_kernel(%arg0: i32, %arg1: memref<16x8xbf16, #tpu.memory_space<vmem>>, %arg2: memref<32x16xbf16, #tpu.memory_space<vmem>>, %arg3: memref<32x1xf32, #tpu.memory_space<vmem>>, %arg4: memref<32x32xbf16, #tpu.memory_space<vmem>>, %arg5: memref<32x1xf32, #tpu.memory_space<vmem>>, %arg6: memref<32x32xbf16, #tpu.memory_space<vmem>>, %arg7: memref<32x1xf32, #tpu.memory_space<vmem>>, %arg8: memref<8x32xbf16, #tpu.memory_space<vmem>>, %arg9: memref<8x1xf32, #tpu.memory_space<vmem>>, %arg10: memref<8x8xf32, #tpu.memory_space<vmem>>) attributes {dimension_semantics = [#tpu.dimension_semantics<parallel>], iteration_bounds = array<i64: 1>, scalar_prefetch = 0 : i64, scratch_operands = 0 : i64, tpu.core_type = #tpu.core_type<tc>, window_params = [{transform_indices = @transform_0, window_bounds = array<i64: 16, 8>}, {pipeline_mode = #tpu.pipeline_mode<synchronous>, transform_indices = @transform_1, window_bounds = array<i64: 32, 16>}, {pipeline_mode = #tpu.pipeline_mode<synchronous>, transform_indices = @transform_2, window_bounds = array<i64: 32, 1>}, {pipeline_mode = #tpu.pipeline_mode<synchronous>, transform_indices = @transform_3, window_bounds = array<i64: 32, 32>}, {pipeline_mode = #tpu.pipeline_mode<synchronous>, transform_indices = @transform_4, window_bounds = array<i64: 32, 1>}, {pipeline_mode = #tpu.pipeline_mode<synchronous>, transform_indices = @transform_5, window_bounds = array<i64: 32, 32>}, {pipeline_mode = #tpu.pipeline_mode<synchronous>, transform_indices = @transform_6, window_bounds = array<i64: 32, 1>}, {pipeline_mode = #tpu.pipeline_mode<synchronous>, transform_indices = @transform_7, window_bounds = array<i64: 8, 32>}, {pipeline_mode = #tpu.pipeline_mode<synchronous>, transform_indices = @transform_8, window_bounds = array<i64: 8, 1>}, {transform_indices = @transform_9, window_bounds = array<i64: 8, 8>}]} {
    %c0 = arith.constant 0 : index
    %c0_0 = arith.constant 0 : index
    %0 = vector.load %arg2[%c0, %c0_0] : memref<32x16xbf16, #tpu.memory_space<vmem>>, vector<32x16xbf16>
    %c0_1 = arith.constant 0 : index
    %c0_2 = arith.constant 0 : index
    %1 = vector.load %arg1[%c0_1, %c0_2] : memref<16x8xbf16, #tpu.memory_space<vmem>>, vector<16x8xbf16>
    %cst = arith.constant dense<0.000000e+00> : vector<32x8xf32>
    %2 = tpu.matmul %0, %1, %cst {dimension_numbers = #tpu.dot_dimension_numbers<[1], [0], [0], [1], [0, 0, 1, 1], [], []>} : vector<32x16xbf16>, vector<16x8xbf16>, vector<32x8xf32> -> vector<32x8xf32>
    %c0_3 = arith.constant 0 : index
    %c0_4 = arith.constant 0 : index
    %3 = vector.load %arg3[%c0_3, %c0_4] : memref<32x1xf32, #tpu.memory_space<vmem>>, vector<32x1xf32>
    %4 = vector.broadcast %3 : vector<32x1xf32> to vector<32x8xf32>
    %5 = arith.addf %2, %4 : vector<32x8xf32>
    %cst_5 = arith.constant 0.000000e+00 : f32
    %6 = vector.broadcast %cst_5 : f32 to vector<32x8xf32>
    %7 = arith.maximumf %5, %6 : vector<32x8xf32>
    %8 = arith.truncf %7 : vector<32x8xf32> to vector<32x8xbf16>
    %c0_6 = arith.constant 0 : index
    %c0_7 = arith.constant 0 : index
    %9 = vector.load %arg4[%c0_6, %c0_7] : memref<32x32xbf16, #tpu.memory_space<vmem>>, vector<32x32xbf16>
    %cst_8 = arith.constant dense<0.000000e+00> : vector<32x8xf32>
    %10 = tpu.matmul %9, %8, %cst_8 {dimension_numbers = #tpu.dot_dimension_numbers<[1], [0], [0], [1], [0, 0, 1, 1], [], []>} : vector<32x32xbf16>, vector<32x8xbf16>, vector<32x8xf32> -> vector<32x8xf32>
    %c0_9 = arith.constant 0 : index
    %c0_10 = arith.constant 0 : index
    %11 = vector.load %arg5[%c0_9, %c0_10] : memref<32x1xf32, #tpu.memory_space<vmem>>, vector<32x1xf32>
    %12 = vector.broadcast %11 : vector<32x1xf32> to vector<32x8xf32>
    %13 = arith.addf %10, %12 : vector<32x8xf32>
    %cst_11 = arith.constant 0.000000e+00 : f32
    %14 = vector.broadcast %cst_11 : f32 to vector<32x8xf32>
    %15 = arith.maximumf %13, %14 : vector<32x8xf32>
    %16 = arith.truncf %15 : vector<32x8xf32> to vector<32x8xbf16>
    %c0_12 = arith.constant 0 : index
    %c0_13 = arith.constant 0 : index
    %17 = vector.load %arg6[%c0_12, %c0_13] : memref<32x32xbf16, #tpu.memory_space<vmem>>, vector<32x32xbf16>
    %cst_14 = arith.constant dense<0.000000e+00> : vector<32x8xf32>
    %18 = tpu.matmul %17, %16, %cst_14 {dimension_numbers = #tpu.dot_dimension_numbers<[1], [0], [0], [1], [0, 0, 1, 1], [], []>} : vector<32x32xbf16>, vector<32x8xbf16>, vector<32x8xf32> -> vector<32x8xf32>
    %c0_15 = arith.constant 0 : index
    %c0_16 = arith.constant 0 : index
    %19 = vector.load %arg7[%c0_15, %c0_16] : memref<32x1xf32, #tpu.memory_space<vmem>>, vector<32x1xf32>
    %20 = vector.broadcast %19 : vector<32x1xf32> to vector<32x8xf32>
    %21 = arith.addf %18, %20 : vector<32x8xf32>
    %cst_17 = arith.constant 0.000000e+00 : f32
    %22 = vector.broadcast %cst_17 : f32 to vector<32x8xf32>
    %23 = arith.maximumf %21, %22 : vector<32x8xf32>
    %24 = arith.truncf %23 : vector<32x8xf32> to vector<32x8xbf16>
    %c0_18 = arith.constant 0 : index
    %c0_19 = arith.constant 0 : index
    %25 = vector.load %arg8[%c0_18, %c0_19] : memref<8x32xbf16, #tpu.memory_space<vmem>>, vector<8x32xbf16>
    %cst_20 = arith.constant dense<0.000000e+00> : vector<8x8xf32>
    %26 = tpu.matmul %25, %24, %cst_20 {dimension_numbers = #tpu.dot_dimension_numbers<[1], [0], [0], [1], [0, 0, 1, 1], [], []>} : vector<8x32xbf16>, vector<32x8xbf16>, vector<8x8xf32> -> vector<8x8xf32>
    %c0_21 = arith.constant 0 : index
    %c0_22 = arith.constant 0 : index
    %27 = vector.load %arg9[%c0_21, %c0_22] : memref<8x1xf32, #tpu.memory_space<vmem>>, vector<8x1xf32>
    %28 = vector.broadcast %27 : vector<8x1xf32> to vector<8x8xf32>
    %29 = arith.addf %26, %28 : vector<8x8xf32>
    %c0_23 = arith.constant 0 : index
    %c0_24 = arith.constant 0 : index
    %30 = vector.load %arg10[%c0_23, %c0_24] : memref<8x8xf32, #tpu.memory_space<vmem>>, vector<8x8xf32>
    tpu.vector_store %arg10[%c0_23, %c0_24], %29 {strides = array<i32>} : memref<8x8xf32, #tpu.memory_space<vmem>>, vector<8x8xf32>,
    return
  }
  func.func @transform_0(%arg0: i32) -> (i32, i32) {
    %c0_i32 = arith.constant 0 : i32
    %c0_i32_0 = arith.constant 0 : i32
    return %c0_i32, %arg0 : i32, i32
  }
  func.func @transform_1(%arg0: i32) -> (i32, i32) {
    %c0_i32 = arith.constant 0 : i32
    %c0_i32_0 = arith.constant 0 : i32
    %c0_i32_1 = arith.constant 0 : i32
    return %c0_i32, %c0_i32_0 : i32, i32
  }
  func.func @transform_2(%arg0: i32) -> (i32, i32) {
    %c0_i32 = arith.constant 0 : i32
    %c0_i32_0 = arith.constant 0 : i32
    %c0_i32_1 = arith.constant 0 : i32
    return %c0_i32, %c0_i32_0 : i32, i32
  }
  func.func @transform_3(%arg0: i32) -> (i32, i32) {
    %c0_i32 = arith.constant 0 : i32
    %c0_i32_0 = arith.constant 0 : i32
    %c0_i32_1 = arith.constant 0 : i32
    return %c0_i32, %c0_i32_0 : i32, i32
  }
  func.func @transform_4(%arg0: i32) -> (i32, i32) {
    %c0_i32 = arith.constant 0 : i32
    %c0_i32_0 = arith.constant 0 : i32
    %c0_i32_1 = arith.constant 0 : i32
    return %c0_i32, %c0_i32_0 : i32, i32
  }
  func.func @transform_5(%arg0: i32) -> (i32, i32) {
    %c0_i32 = arith.constant 0 : i32
    %c0_i32_0 = arith.constant 0 : i32
    %c0_i32_1 = arith.constant 0 : i32
    return %c0_i32, %c0_i32_0 : i32, i32
  }
  func.func @transform_6(%arg0: i32) -> (i32, i32) {
    %c0_i32 = arith.constant 0 : i32
    %c0_i32_0 = arith.constant 0 : i32
    %c0_i32_1 = arith.constant 0 : i32
    return %c0_i32, %c0_i32_0 : i32, i32
  }
  func.func @transform_7(%arg0: i32) -> (i32, i32) {
    %c0_i32 = arith.constant 0 : i32
    %c0_i32_0 = arith.constant 0 : i32
    %c0_i32_1 = arith.constant 0 : i32
    return %c0_i32, %c0_i32_0 : i32, i32
  }
  func.func @transform_8(%arg0: i32) -> (i32, i32) {
    %c0_i32 = arith.constant 0 : i32
    %c0_i32_0 = arith.constant 0 : i32
    %c0_i32_1 = arith.constant 0 : i32
    return %c0_i32, %c0_i32_0 : i32, i32
  }
  func.func @transform_9(%arg0: i32) -> (i32, i32) {
    %c0_i32 = arith.constant 0 : i32
    %c0_i32_0 = arith.constant 0 : i32
    return %c0_i32, %arg0 : i32, i32
  }
}

</mosaic_0001>

<bundles_post_ra>
// kernel: tpu_custom_call.1
= control target key start
LH: loop header
LB: loop body
LE: loop exit
PB: predicated region body
PF: predicated region fallthrough
CT: control target
= control target key end

     0   :  { %vm80_vm0 = vcmask 130048   ;;  %v502_v3 = vmov 0   ;;  %s636_s0 = inlined_call_operand.vmem [shape: bf16[16,8], index: 0, kind: input, shape index: {}]   ;;  %s637_s1 = inlined_call_operand.vmem [shape: bf16[32,16], index: 1, kind: input, shape index: {}]   ;;  %s638_s2 = inlined_call_operand.vmem [shape: f32[32,1], index: 2, kind: input, shape index: {}]   ;;  %s639_s3 = inlined_call_operand.vmem [shape: bf16[32,32], index: 3, kind: input, shape index: {}]   ;;  %s640_s4 = inlined_call_operand.vmem [shape: f32[32,1], index: 4, kind: input, shape index: {}]   ;;  %s641_s5 = inlined_call_operand.vmem [shape: bf16[32,32], index: 5, kind: input, shape index: {}]   ;;  %s642_s6 = inlined_call_operand.vmem [shape: f32[32,1], index: 6, kind: input, shape index: {}]   ;;  %s643_s7 = inlined_call_operand.vmem [shape: bf16[8,32], index: 7, kind: input, shape index: {}]   ;;  %s644_s8 = inlined_call_operand.vmem [shape: f32[8,1], index: 8, kind: input, shape index: {}]   ;;  %s645_s9 = inlined_call_operand.hbm [shape: f32[8,8], index: 9, kind: output, shape index: {}]  }
   0x1   :  { %v471_v0 = vld [vmem:[%s636_s0] sm:$0xff]   ;;  %v473_v2 = vld [vmem:[%s637_s1 + $0x8] sm:$0xff]   ;;  %469 = vset.pattern.permute.xlu0 %v502_v3  ;;  %v42_v5 = vld [vmem:[%s638_s2 + $0x10] sm:$0xff]  ;;  %470 = vset.pattern.permute.xlu1 %v502_v3 }
   0x2   :  { %v472_v1 = vld [vmem:[%s637_s1] sm:$0xff]   ;;  %435 = vmatprep.subr.bf16.mxu0 %v471_v0  ;;  %v41_v6 = vld [vmem:[%s638_s2 + $0x8] sm:$0xff]  ;;  %56 = vperm.xlu1 %470, %v42_v5   ;;  %v43_v7 = vld [vmem:[%s638_s2 + $0x18] sm:$0xff] }
   0x3   :  { %436 = vmatpush3.bf16.msra.mxu0 %v471_v0  ;;  %437 = vmatprep.mubr.msk.bf16.mxu0 %vm80_vm0, %v472_v1  ;;  %v40_v4 = vld [vmem:[%s638_s2] sm:$0xff]  ;;  %v147_v9 = vld [vmem:[%s640_s4 + $0x8] sm:$0xff] }
   0x4   :  { %46 = vperm.xlu0 %469, %v40_v4   ;;  %v146_v8 = vld [vmem:[%s640_s4] sm:$0xff] }
   0x6   :  { %438 = vmatmul.mubr.msk.bf16.vlgmr.msra.gmra.mrb[0].mxu0 %vm80_vm0, %v473_v2  ;;  %61 = vperm.xlu1 %470, %v43_v7  }
   0x8   :  { %51 = vperm.xlu0 %469, %v41_v6  }
   0x9   :  { %14 = vsyncpa [#allocation3], 0  ;;  %v148_v10 = vld [vmem:[%s640_s4 + $0x10] sm:$0xff]  ;;  %v149_v11 = vld [vmem:[%s640_s4 + $0x18] sm:$0xff]  ;;  %vm180_vm1 = vcmask 261120   ;;  %v503_v57 = vmov 0.0  }
   0xa   :  { %157 = vperm.xlu1 %470, %v147_v9   ;;  %v246_v12 = vld [vmem:[%s642_s6] sm:$0xff]  ;;  %v247_v13 = vld [vmem:[%s642_s6 + $0x8] sm:$0xff]  ;;  %v248_v14 = vld [vmem:[%s642_s6 + $0x10] sm:$0xff]  ;;  %vm504_vm2 = vmmov 0   ;;  %s505_s20 = smov [#allocation2]   ;;  %vm391_vm3 = vcmask 64512  }
   0xb   :  { %v249_v15 = vld [vmem:[%s642_s6 + $0x18] sm:$0xff]  ;;  %v342_v16 = vld [vmem:[%s644_s8] sm:$0xff]  ;;  %v475_v36 = vld [vmem:[%s639_s3 + $0x8] sm:$0xff]   ;;  %s399_s21 = sshll.u32 %s505_s20, 4  ;;  %s400_s21 = int_to_ptr.vmem [resolvable:$true] %s399_s21 }
   0xc   :  { %152 = vperm.xlu0 %469, %v146_v8   ;;  %v474_v17 = vld [vmem:[%s639_s3] sm:$0xff]   ;;  %v477_v56 = vld [vmem:[%s641_s5 + $0x8] sm:$0xff]   ;;  %s478_s22 = scalar_lea.vmem %s400_s21, 128  ;;  %p483_p1 = scmp.lt.s32.totalorder %s400_s21, %s400_s21 }
   0xd   :  { %445 = vmatprep.mubr.msk.bf16.mxu1 %vm180_vm1, %v474_v17  ;;  %v476_v37 = vld [vmem:[%s641_s5] sm:$0xff]   ;;  %p479_p0 = scmp.ne.s32.totalorder %s400_s21, %s478_s22  ;;  %p484_p2 = scmp.lt.s32.totalorder %s478_s22, %s478_s22 }
   0xe   :  { %167 = vperm.xlu1 %470, %v149_v11   ;;  %453 = vmatprep.mubr.msk.bf16.mxu0 %vm180_vm1, %v476_v37 }
   0xf   :  { %p485_p3 = por %p484_p2, %p483_p1 }
  0x10   :  { %162 = vperm.xlu0 %469, %v148_v10  }
  0x11   :  { %p486_p4 = pnand %p485_p3, %p479_p0 }
  0x12   :  { %257 = vperm.xlu1 %470, %v247_v13  }
  0x14   :  { %252 = vperm.xlu0 %469, %v246_v12   ;;  %v341_v12 = vld [vmem:[%s643_s7] sm:$0xf] }
  0x16   :  { %267 = vperm.xlu1 %470, %v249_v15  }
  0x18   :  { %262 = vperm.xlu0 %469, %v248_v14  }
  0x1c   :  { %345 = vperm.xlu0 %469, %v342_v16  }
  0x81   :  { %v57_v18 = vpop.permute.xlu1 %56 }
  0x83   :  { %v47_v19 = vpop.permute.xlu0 %46 }
  0x85   :  { %v62_v23 = vpop.permute.xlu1 %61 }
  0x87   :  { %v52_v26 = vpop.permute.xlu0 %51 }
  0x89   :  { %v158_v39 = vpop.permute.xlu1 %157 }
  0x8b   :  { %v153_v38 = vpop.permute.xlu0 %152 }
  0x8d   :  { %v168_v44 = vpop.permute.xlu1 %167 }
  0x8f   :  { %v163_v40 = vpop.permute.xlu0 %162 }
  0x91   :  { %v258_v59 = vpop.permute.xlu1 %257 }
  0x93   :  { %v253_v58 = vpop.permute.xlu0 %252 }
  0x95   :  { %v268_v0 = vpop.permute.xlu1 %267 }
  0x97   :  { %v263_v60 = vpop.permute.xlu0 %262 }
  0x9b   :  { %v346_v13 = vpop.permute.xlu0 %345 }
  0xd9   :  { %v439_v20 = vpop.f32.mrb[0].mxu0 }
  0xda   :  { %v130_v21 = vadd.f32 %v439_v20, %v57_v18  ;;  %v121_v22 = vpop.f32.mrb[1].mxu0 }
  0xdb   :  { %v122_v24 = vadd.f32 %v121_v22, %v47_v19  ;;  %v440_v25 = vpop.f32.mrb[2].mxu0 }
  0xdc   :  { %v133_v27 = vadd.f32 %v440_v25, %v62_v23  ;;  %v124_v28 = vpop.f32.mrb[3].mxu0  ;;  %v138_v30 = vmax.f32 %v130_v21, 0.0 }
  0xdd   :  { %v125_v29 = vadd.f32 %v124_v28, %v52_v26  ;;  %v136_v32 = vmax.f32 %v122_v24, 0.0 }
  0xde   :  { %v139_v31 = vmax.f32 %v133_v27, 0.0 }
  0xdf   :  { %v137_v33 = vmax.f32 %v125_v29, 0.0 }
  0xe0   :  { %v141_v34 = vpack.c.bf16 %v139_v31, %v138_v30 }
  0xe1   :  { %v140_v35 = vpack.c.bf16 %v137_v33, %v136_v32 }
  0xe3   :  { %441 = vmatprep.subr.bf16.mxu1 %v140_v35 }
  0xe4   :  { %442 = vmatpush3.bf16.msra.mxu1 %v140_v35 }
  0xe5   :  { %443 = vmatprep.subr.bf16.mxu1 %v141_v34 }
  0xe8   :  { %444 = vmatpush3.bf16.msra.mxu1 %v141_v34 }
  0xe9   :  { %457 = vmatprep.subr.bf16.mxu1 %v503_v57 }
  0xeb   :  { %446 = vmatmul.mubr.msk.bf16.vlgmr.msra.gmra.mrb[0].mxu1 %vm180_vm1, %v475_v36 }
  0xec   :  { %461 = vmatprep.mubr.msk.bf16.mxu1 %vm504_vm2, %v503_v57 }
 0x1be   :  { %v447_v41 = vpop.f32.mrb[0].mxu1 }
 0x1bf   :  { %v230_v42 = vadd.f32 %v447_v41, %v163_v40  ;;  %v221_v43 = vpop.f32.mrb[1].mxu1 }
 0x1c0   :  { %v222_v45 = vadd.f32 %v221_v43, %v153_v38  ;;  %v448_v46 = vpop.f32.mrb[2].mxu1 }
 0x1c1   :  { %v233_v47 = vadd.f32 %v448_v46, %v168_v44  ;;  %v224_v48 = vpop.f32.mrb[3].mxu1  ;;  %v238_v50 = vmax.f32 %v230_v42, 0.0 }
 0x1c2   :  { %v225_v49 = vadd.f32 %v224_v48, %v158_v39  ;;  %v236_v52 = vmax.f32 %v222_v45, 0.0 }
 0x1c3   :  { %v239_v51 = vmax.f32 %v233_v47, 0.0 }
 0x1c4   :  { %v237_v53 = vmax.f32 %v225_v49, 0.0 }
 0x1c5   :  { %v241_v54 = vpack.c.bf16 %v239_v51, %v238_v50 }
 0x1c6   :  { %v240_v55 = vpack.c.bf16 %v237_v53, %v236_v52 }
 0x1c8   :  { %449 = vmatprep.subr.bf16.mxu0 %v240_v55 }
 0x1c9   :  { %450 = vmatpush3.bf16.msra.mxu0 %v240_v55 }
 0x1ca   :  { %451 = vmatprep.subr.bf16.mxu0 %v241_v54 }
 0x1cd   :  { %452 = vmatpush3.bf16.msra.mxu0 %v241_v54 }
 0x1d0   :  { %454 = vmatmul.mubr.msk.bf16.vlgmr.msra.gmra.mrb[4].mxu0 %vm180_vm1, %v477_v56 }
 0x2a3   :  { %v455_v61 = vpop.f32.mrb[4].mxu0 }
 0x2a4   :  { %v329_v62 = vadd.f32 %v455_v61, %v263_v60  ;;  %v320_v63 = vpop.f32.mrb[5].mxu0 }
 0x2a5   :  { %v321_v1 = vadd.f32 %v320_v63, %v253_v58  ;;  %v456_v2 = vpop.f32.mrb[6].mxu0 }
 0x2a6   :  { %v332_v3 = vadd.f32 %v456_v2, %v268_v0  ;;  %v323_v4 = vpop.f32.mrb[7].mxu0  ;;  %v337_v6 = vmax.f32 %v329_v62, 0.0 }
 0x2a7   :  { %v324_v5 = vadd.f32 %v323_v4, %v258_v59  ;;  %v335_v8 = vmax.f32 %v321_v1, 0.0 }
 0x2a8   :  { %v338_v7 = vmax.f32 %v332_v3, 0.0 }
 0x2a9   :  { %v336_v9 = vmax.f32 %v324_v5, 0.0 }
 0x2aa   :  { %v340_v10 = vpack.c.bf16 %v338_v7, %v337_v6 }
 0x2ab   :  { %v339_v11 = vpack.c.bf16 %v336_v9, %v335_v8 }
 0x2ad   :  { %458 = vmatpush3.bf16.msra.mxu1 %v339_v11 }
 0x2ae   :  { %459 = vmatprep.subr.bf16.mxu1 %v503_v57 }
 0x2b1   :  { %460 = vmatpush3.bf16.msra.mxu1 %v340_v10 }
 0x2b4   :  { %462 = vmatmul.mubr.msk.bf16.vlgmr.msra.gmra.mrb[4].mxu1 %vm180_vm1, %v341_v12 }
 0x387   :  { %v385_v14 = vpop.f32.mrb[4].mxu1 }
 0x388   :  { %v386_v15 = vadd.f32 %v385_v14, %v346_v13  ;;  %v463_v16 = vpop.f32.mrb[5].mxu1 }
 0x389   :  { %v388_v17 = vpop.f32.mrb[6].mxu1 }
 0x38a   :  { %v464_v18 = vpop.f32.mrb[7].mxu1  ;;  %392 = vst.msk [vmem:[#allocation2] sm:$0xff] %vm391_vm3, %v386_v15 }
 0x38b   :  { %489 = shalt.err (!%p486_p4)
}
 0x38c   :  { %s490_s24 = scalar_lea.hbm %s645_s9, 128 }
 0x38d   :  { %p491_p5 = scmp.ne.s32.totalorder %s645_s9, %s490_s24  ;;  %p494_p6 = scmp.lt.u32.totalorder %s490_s24, %s645_s9 }
 0x38f   :  { %p496_p7 = pnand %p494_p6, %p491_p5 }
 0x391   :  { %499 = shalt.err (!%p496_p7)
}
 0x392   :  { %402 = dma.vmem_to_hbm [thread:$0]  %s400_s21, 128, %s645_s9, [#allocation3]  }
 0x393   :  { %500 = dma.done.wait [#allocation3], 128  }
 0x394   :  { %501 = vsyncadd [#allocation3], 4294967168 }
 0x395   :  { %406 = vsyncpa [#allocation3], 1 }

</bundles_post_ra>
